<compile_context>
chip_gen: v6e
topology: v6e:2x2x1
jax: 0.10.0
libtpu: 0.0.40
codegen_flags: <defaults>
</compile_context>

<pallas_src>
import functools

import jax
import jax.numpy as jnp
from jax.experimental import pallas as pl
from jax.experimental.pallas import tpu as pltpu


@functools.lru_cache(maxsize=None)
def _vmem_budget():
    """(vmem_limit_bytes, block_target_bytes), generation-aware."""
    try:
        cap = int(pltpu.get_tpu_info().vmem_capacity_bytes)
    except Exception:
        cap = 64 * 1024 * 1024  # conservative default (v7x-sized)
    if cap >= 100 * 1024 * 1024:          # v5e / v6e: 128 MiB physical VMEM
        return 64 * 1024 * 1024, 4 * 1024 * 1024
    return 40 * 1024 * 1024, 2 * 1024 * 1024   # v7x: 64 MiB physical VMEM


def _pack_factor(c, hw, dtype):
    """Sublane packing factor s: view (B,C,HW) as (B,C*s,HW/s) to fill vregs."""
    sublanes_per_vreg = max(1, (8 * 4) // jnp.dtype(dtype).itemsize)  # 8 f32 / 16 bf16
    if c >= sublanes_per_vreg:
        return 1
    s = sublanes_per_vreg // c
    while s > 1 and hw % s != 0:
        s -= 1
    return s


def _pick_hw_tile(hw, c, itemsize, block_bytes):
    """Largest lane tile (multiple of 128 or full extent) within block_bytes.
    Prefers a tile that divides HW so the steady state needs no lane mask."""
    if hw <= 128:
        # TODO(synk): for HW < 128 with large C (deep Glow levels), fold channels
        # into lanes to avoid masked vst; not exercised by this shape regime.
        return hw
    per_lane = max(1, c * itemsize)
    lanes = max(128, (block_bytes // per_lane) // 128 * 128)
    if lanes >= hw:
        return hw
    cand, lo = lanes, max(128, lanes // 2)
    while cand >= lo:
        if hw % cand == 0:
            return cand
        cand -= 128
    return lanes  # no nearby divisor: keep big tile, mask only the last block


# ----------------------------------------------------------------------------
# Kernel 1 (init): fused per-channel sum(x) and sum(x^2) in ONE HBM sweep.
# Lane-wide f32 VMEM accumulators, reset at the first HW tile of each batch
# element and reduced cross-lane (XLU) exactly once at the last HW tile.
# Per-batch partials (B, Cp, 1) let the B axis run "parallel" (v7x megacore);
# the tiny batch fold happens in plain JAX.
# ----------------------------------------------------------------------------
def _sum_sumsq_kernel(x_ref, sum_ref, sq_ref, acc_s, acc_q, *, hw, hw_tile, mask):
    j = pl.program_id(1)
    last = pl.num_programs(1) - 1

    @pl.when(j == 0)
    def _():
        acc_s[...] = jnp.zeros_like(acc_s)
        acc_q[...] = jnp.zeros_like(acc_q)

    v = x_ref[0].astype(jnp.float32)          # (Cp, hw_tile)

    if mask:  # partial last HW tile: pay the lane mask only on that step
        @pl.when(j == last)
        def _():
            lane = jax.lax.broadcasted_iota(jnp.int32, v.shape, 1)
            vm = jnp.where(j * hw_tile + lane < hw, v, 0.0)
            acc_s[...] += vm
            acc_q[...] += vm * vm

        @pl.when(j != last)
        def _():
            acc_s[...] += v
            acc_q[...] += v * v
    else:
        acc_s[...] += v
        acc_q[...] += v * v

    @pl.when(j == last)
    def _():
        sum_ref[0] = jnp.sum(acc_s[...], axis=1, keepdims=True)
        sq_ref[0] = jnp.sum(acc_q[...], axis=1, keepdims=True)


def _channel_sum_sumsq(x_flat):
    """x_flat: (B, Cp, HW). Returns (sum, sumsq), each (Cp, 1) f32."""
    B, Cp, HW = x_flat.shape
    vmem_limit, block_bytes = _vmem_budget()
    hw_tile = _pick_hw_tile(HW, Cp, max(jnp.dtype(x_flat.dtype).itemsize, 4),
                            block_bytes)
    nhw = pl.cdiv(HW, hw_tile)
    mask = (HW % hw_tile) != 0
    part_sum, part_sq = pl.pallas_call(
        functools.partial(_sum_sumsq_kernel, hw=HW, hw_tile=hw_tile, mask=mask),
        out_shape=(jax.ShapeDtypeStruct((B, Cp, 1), jnp.float32),
                   jax.ShapeDtypeStruct((B, Cp, 1), jnp.float32)),
        grid=(B, nhw),
        in_specs=[pl.BlockSpec((1, Cp, hw_tile), lambda b, j: (b, 0, j))],
        out_specs=(pl.BlockSpec((1, Cp, 1), lambda b, j: (b, 0, 0)),
                   pl.BlockSpec((1, Cp, 1), lambda b, j: (b, 0, 0))),
        scratch_shapes=[pltpu.VMEM((Cp, hw_tile), jnp.float32),
                        pltpu.VMEM((Cp, hw_tile), jnp.float32)],
        compiler_params=pltpu.CompilerParams(
            dimension_semantics=("parallel", "arbitrary"),
            vmem_limit_bytes=vmem_limit,
        ),
    )(x_flat)
    # Tiny (B, Cp, 1) -> (Cp, 1) fold in plain JAX.
    return jnp.sum(part_sum, axis=0), jnp.sum(part_sq, axis=0)


# ----------------------------------------------------------------------------
# Kernel 2 (forward): out = (x + bias) * exp(logs). Pure VPU add+mul;
# exp(logs) is precomputed in the wrapper; both grid axes "parallel".
# ----------------------------------------------------------------------------
def _actnorm_fwd_kernel(x_ref, bias_ref, scale_ref, out_ref):
    out_ref[...] = ((x_ref[...] + bias_ref[...]) * scale_ref[...]).astype(out_ref.dtype)


def actnorm_forward(x_flat, bias_c, scale_c):
    """x_flat: (B, Cp, HW); bias_c/scale_c: (1, Cp, 1) f32. Returns (B, Cp, HW)."""
    B, Cp, HW = x_flat.shape
    vmem_limit, block_bytes = _vmem_budget()
    hw_tile = _pick_hw_tile(HW, Cp, jnp.dtype(x_flat.dtype).itemsize, block_bytes)
    grid = (B, pl.cdiv(HW, hw_tile))
    return pl.pallas_call(
        _actnorm_fwd_kernel,
        out_shape=jax.ShapeDtypeStruct((B, Cp, HW), x_flat.dtype),
        grid=grid,
        in_specs=[
            pl.BlockSpec((1, Cp, hw_tile), lambda b, j: (b, 0, j)),
            pl.BlockSpec((1, Cp, 1), lambda b, j: (0, 0, 0)),
            pl.BlockSpec((1, Cp, 1), lambda b, j: (0, 0, 0)),
        ],
        out_specs=pl.BlockSpec((1, Cp, hw_tile), lambda b, j: (b, 0, j)),
        compiler_params=pltpu.CompilerParams(
            dimension_semantics=("parallel", "parallel"),
            vmem_limit_bytes=vmem_limit,
        ),
    )(x_flat, bias_c, scale_c)


# ----------------------------------------------------------------------------
# Module-level wrapper mirroring ActNorm2d.forward (reverse=False, training).
# ----------------------------------------------------------------------------
class ActNorm2d:
    def __init__(self, num_channels, scale=1.0):
        self.num_channels = num_channels
        self.scale = float(scale)
        self.initiated = False
        self.training = True
        # parameters: shape [1, C, 1, 1], zero-initialized (deterministic)
        self.bias = jnp.zeros((1, num_channels, 1, 1), jnp.float32)
        self.logs = jnp.zeros((1, num_channels, 1, 1), jnp.float32)

    def _check_input_dim(self, x):
        assert x.ndim == 4
        assert x.shape[1] == self.num_channels

    def initialize_parameters(self, x):
        self._check_input_dim(x)
        if not self.training:
            return
        B, C, H, W = x.shape
        HW = H * W
        s = _pack_factor(C, HW, x.dtype)
        xp = x.reshape(B, C * s, HW // s)               # free, contiguous view
        sum_p, sq_p = _channel_sum_sumsq(xp)            # (C*s, 1) each, f32
        sum_c = jnp.sum(sum_p.reshape(C, s), axis=1)    # (C,)
        sq_c = jnp.sum(sq_p.reshape(C, s), axis=1)      # (C,)
        n = B * HW
        mean = sum_c / n
        # Single-pass moments (f32 accumulation): var = E[x^2] - mean^2.
        # Can differ from PyTorch's two-pass init at ulp level when |mean| >> std.
        var = jnp.maximum(sq_c / n - mean * mean, 0.0)
        bias_c = -mean
        logs_c = jnp.log(self.scale / (jnp.sqrt(var) + 1e-6))
        self.bias = bias_c.reshape(1, C, 1, 1).astype(jnp.float32)
        self.logs = logs_c.reshape(1, C, 1, 1).astype(jnp.float32)
        self.initiated = True

    def forward(self, x, logdet=None, reverse=False):
        if not self.initiated:
            self.initialize_parameters(x)
        self._check_input_dim(x)
        assert not reverse  # TODO(synk): reverse path (x * exp(-logs) - bias) not exercised here
        B, C, H, W = x.shape
        HW = H * W
        s = _pack_factor(C, HW, x.dtype)
        xp = x.reshape(B, C * s, HW // s)               # free, contiguous view
        bias_p = jnp.repeat(self.bias.reshape(C), s).reshape(1, C * s, 1)
        scale_p = jnp.repeat(jnp.exp(self.logs).reshape(C), s).reshape(1, C * s, 1)
        out = actnorm_forward(xp, bias_p.astype(jnp.float32),
                              scale_p.astype(jnp.float32))
        out = out.reshape(B, C, H, W)
        if logdet is not None:
            # d_logdet = pixels * sum(logs): trivial C-element reduction, plain JAX.
            logdet = logdet + jnp.float32(H * W) * jnp.sum(self.logs)
        return out, logdet


if __name__ == "__main__":
    key = jax.random.PRNGKey(0)
    B, C, H, W = 2, 4, 16, 16
    x = jax.random.normal(key, (B, C, H, W), dtype=jnp.float32)
    logdet0 = jnp.zeros((B,), jnp.float32)

    layer = ActNorm2d(num_channels=C, scale=1.0)
    out, logdet = layer.forward(x, logdet=logdet0, reverse=False)
    out = jax.block_until_ready(out)
    logdet = jax.block_until_ready(logdet)

    # Pure-JAX reference (same math as the PyTorch module, training init path).
    mean = jnp.mean(x, axis=(0, 2, 3), keepdims=True)
    bias_ref = -mean
    var_ref = jnp.mean((x + bias_ref) ** 2, axis=(0, 2, 3), keepdims=True)
    logs_ref = jnp.log(1.0 / (jnp.sqrt(var_ref) + 1e-6))
    out_ref = (x + bias_ref) * jnp.exp(logs_ref)
    logdet_ref = logdet0 + (H * W) * jnp.sum(logs_ref)

    assert out.shape == x.shape and logdet.shape == (B,)
    assert jnp.allclose(out, out_ref, rtol=1e-4, atol=1e-4)
    assert jnp.allclose(logdet, logdet_ref, rtol=1e-4, atol=1e-4)
    print("KERNEL_OK")
</pallas_src>

<mosaic_0001>
module attributes {stable_mosaic.version = 11 : i64} {
  func.func @_sum_sumsq_kernel(%arg0: i32, %arg1: i32, %arg2: memref<1x8x128xf32, #tpu.memory_space<vmem>>, %arg3: memref<1x8x1xf32, #tpu.memory_space<vmem>>, %arg4: memref<1x8x1xf32, #tpu.memory_space<vmem>>, %arg5: memref<8x128xf32, #tpu.memory_space<vmem>>, %arg6: memref<8x128xf32, #tpu.memory_space<vmem>>) attributes {dimension_semantics = [#tpu.dimension_semantics<parallel>, #tpu.dimension_semantics<arbitrary>], iteration_bounds = array<i64: 2, 1>, scalar_prefetch = 0 : i64, scratch_operands = 2 : i64, tpu.core_type = #tpu.core_type<tc>, window_params = [{transform_indices = @transform_0, window_bounds = array<i64: 1, 8, 128>}, {transform_indices = @transform_1, window_bounds = array<i64: 1, 8, 1>}, {transform_indices = @transform_2, window_bounds = array<i64: 1, 8, 1>}]} {
    %c0_i32 = arith.constant 0 : i32
    %0 = arith.cmpi eq, %arg1, %c0_i32 : i32
    %1 = arith.extui %0 : i1 to i32
    %c0_i32_0 = arith.constant 0 : i32
    %2 = arith.cmpi ne, %1, %c0_i32_0 : i32
    scf.if %2 {
      %cst = arith.constant 0.000000e+00 : f32
      %15 = vector.broadcast %cst : f32 to vector<8x128xf32>
      %c0_13 = arith.constant 0 : index
      %c0_14 = arith.constant 0 : index
      %16 = vector.load %arg5[%c0_13, %c0_14] : memref<8x128xf32, #tpu.memory_space<vmem>>, vector<8x128xf32>
      tpu.vector_store %arg5[%c0_13, %c0_14], %15 {strides = array<i32>} : memref<8x128xf32, #tpu.memory_space<vmem>>, vector<8x128xf32>,
      %cst_15 = arith.constant 0.000000e+00 : f32
      %17 = vector.broadcast %cst_15 : f32 to vector<8x128xf32>
      %c0_16 = arith.constant 0 : index
      %c0_17 = arith.constant 0 : index
      %18 = vector.load %arg6[%c0_16, %c0_17] : memref<8x128xf32, #tpu.memory_space<vmem>>, vector<8x128xf32>
      tpu.vector_store %arg6[%c0_16, %c0_17], %17 {strides = array<i32>} : memref<8x128xf32, #tpu.memory_space<vmem>>, vector<8x128xf32>,
    } else {
    }
    %c0 = arith.constant 0 : index
    %c0_1 = arith.constant 0 : index
    %c0_2 = arith.constant 0 : index
    %3 = vector.load %arg2[%c0, %c0_1, %c0_2] : memref<1x8x128xf32, #tpu.memory_space<vmem>>, vector<1x8x128xf32>
    %4 = vector.shape_cast %3 : vector<1x8x128xf32> to vector<8x128xf32>
    %c0_3 = arith.constant 0 : index
    %c0_4 = arith.constant 0 : index
    %5 = vector.load %arg5[%c0_3, %c0_4] : memref<8x128xf32, #tpu.memory_space<vmem>>, vector<8x128xf32>
    %6 = arith.addf %5, %4 : vector<8x128xf32>
    %c0_5 = arith.constant 0 : index
    %c0_6 = arith.constant 0 : index
    %7 = vector.load %arg5[%c0_5, %c0_6] : memref<8x128xf32, #tpu.memory_space<vmem>>, vector<8x128xf32>
    tpu.vector_store %arg5[%c0_5, %c0_6], %6 {strides = array<i32>} : memref<8x128xf32, #tpu.memory_space<vmem>>, vector<8x128xf32>,
    %c0_7 = arith.constant 0 : index
    %c0_8 = arith.constant 0 : index
    %8 = vector.load %arg6[%c0_7, %c0_8] : memref<8x128xf32, #tpu.memory_space<vmem>>, vector<8x128xf32>
    %9 = arith.mulf %4, %4 : vector<8x128xf32>
    %10 = arith.addf %8, %9 : vector<8x128xf32>
    %c0_9 = arith.constant 0 : index
    %c0_10 = arith.constant 0 : index
    %11 = vector.load %arg6[%c0_9, %c0_10] : memref<8x128xf32, #tpu.memory_space<vmem>>, vector<8x128xf32>
    tpu.vector_store %arg6[%c0_9, %c0_10], %10 {strides = array<i32>} : memref<8x128xf32, #tpu.memory_space<vmem>>, vector<8x128xf32>,
    %c0_i32_11 = arith.constant 0 : i32
    %12 = arith.cmpi eq, %arg1, %c0_i32_11 : i32
    %13 = arith.extui %12 : i1 to i32
    %c0_i32_12 = arith.constant 0 : i32
    %14 = arith.cmpi ne, %13, %c0_i32_12 : i32
    scf.if %14 {
      %c0_13 = arith.constant 0 : index
      %c0_14 = arith.constant 0 : index
      %15 = vector.load %arg5[%c0_13, %c0_14] : memref<8x128xf32, #tpu.memory_space<vmem>>, vector<8x128xf32>
      %cst = arith.constant dense<0.000000e+00> : vector<8xf32>
      %16 = vector.multi_reduction <add>, %15, %cst [1] : vector<8x128xf32> to vector<8xf32>
      %17 = vector.shape_cast %16 : vector<8xf32> to vector<8x1xf32>
      %c0_15 = arith.constant 0 : index
      %c0_16 = arith.constant 0 : index
      %c0_17 = arith.constant 0 : index
      %18 = vector.load %arg3[%c0_15, %c0_16, %c0_17] : memref<1x8x1xf32, #tpu.memory_space<vmem>>, vector<1x8x1xf32>
      %19 = vector.shape_cast %18 : vector<1x8x1xf32> to vector<8x1xf32>
      %20 = vector.shape_cast %17 : vector<8x1xf32> to vector<1x8x1xf32>
      tpu.vector_store %arg3[%c0_15, %c0_16, %c0_17], %20 {strides = array<i32>} : memref<1x8x1xf32, #tpu.memory_space<vmem>>, vector<1x8x1xf32>,
      %c0_18 = arith.constant 0 : index
      %c0_19 = arith.constant 0 : index
      %21 = vector.load %arg6[%c0_18, %c0_19] : memref<8x128xf32, #tpu.memory_space<vmem>>, vector<8x128xf32>
      %cst_20 = arith.constant dense<0.000000e+00> : vector<8xf32>
      %22 = vector.multi_reduction <add>, %21, %cst_20 [1] : vector<8x128xf32> to vector<8xf32>
      %23 = vector.shape_cast %22 : vector<8xf32> to vector<8x1xf32>
      %c0_21 = arith.constant 0 : index
      %c0_22 = arith.constant 0 : index
      %c0_23 = arith.constant 0 : index
      %24 = vector.load %arg4[%c0_21, %c0_22, %c0_23] : memref<1x8x1xf32, #tpu.memory_space<vmem>>, vector<1x8x1xf32>
      %25 = vector.shape_cast %24 : vector<1x8x1xf32> to vector<8x1xf32>
      %26 = vector.shape_cast %23 : vector<8x1xf32> to vector<1x8x1xf32>
      tpu.vector_store %arg4[%c0_21, %c0_22, %c0_23], %26 {strides = array<i32>} : memref<1x8x1xf32, #tpu.memory_space<vmem>>, vector<1x8x1xf32>,
    } else {
    }
    return
  }
  func.func @transform_0(%arg0: i32, %arg1: i32) -> (i32, i32, i32) {
    %c0_i32 = arith.constant 0 : i32
    %c0_i32_0 = arith.constant 0 : i32
    return %arg0, %c0_i32, %arg1 : i32, i32, i32
  }
  func.func @transform_1(%arg0: i32, %arg1: i32) -> (i32, i32, i32) {
    %c0_i32 = arith.constant 0 : i32
    %c0_i32_0 = arith.constant 0 : i32
    %c0_i32_1 = arith.constant 0 : i32
    return %arg0, %c0_i32, %c0_i32_0 : i32, i32, i32
  }
  func.func @transform_2(%arg0: i32, %arg1: i32) -> (i32, i32, i32) {
    %c0_i32 = arith.constant 0 : i32
    %c0_i32_0 = arith.constant 0 : i32
    %c0_i32_1 = arith.constant 0 : i32
    return %arg0, %c0_i32, %c0_i32_0 : i32, i32, i32
  }
}

</mosaic_0001>

<bundles_post_ra>
// kernel: tpu_custom_call.1
= control target key start
LH: loop header
LB: loop body
LE: loop exit
PB: predicated region body
PF: predicated region fallthrough
CT: control target
= control target key end

     0   :  { %8 = vsyncpa [#allocation5], 0  ;;  %s582_s0 = inlined_call_operand.hbm [shape: f32[2,8,128], index: 0, kind: input, shape index: {}]   ;;  %s583_s1 = inlined_call_operand.vmem [shape: f32[2,8,1], index: 1, kind: output, shape index: {0}]   ;;  %s584_s2 = inlined_call_operand.vmem [shape: f32[2,8,1], index: 2, kind: output, shape index: {1}]  }
   0x1   :  { %10 = vsyncpa [#allocation5 + $0x1], 0  ;;  %s479_s9 = smov 0   ;;  %s481_s10 = smov 0  }
   0x2   :  { %s483_s11 = smov 0   ;;  %s485_s12 = smov 0  }
   0x3   :  { %s487_s13 = smov 0   ;;  %s489_s14 = smov 0  }
   0x4 LB: > { %s316_s15 = sadd.s32 4294967295, %s461_s14   ;;  %s28_s16 = sadd.s32 1, %s457_s13  ;;  %s461_s14 = sphi %s489_s14, %s16_s14   ;;  %s457_s13 = sphi %s487_s13, %s592_s13   ;;  %s453_s12 = sphi %s485_s12, %s591_s12   ;;  %s449_s11 = sphi %s483_s11, %s590_s11   ;;  %s445_s10 = sphi %s481_s10, %s589_s10   ;;  %s441_s9 = sphi %s479_s9, %s588_s9  }
   0x5   : > { %p30_p0 = scmp.ge.s32.totalorder %s28_s16, 2  ;;  %s37_s17 = sadd.s32 1, %s449_s11 }
   0x6   : > { %p44_p1 = scmp.ne.s32.totalorder %s449_s11, %s445_s10  ;;  %p45_p2 = scmp.eq.s32.totalorder %s461_s14, 0 }
   0x7   : > { %s594_s16 = smov (%p30_p0, %s28_s16), 0  ;;  %p50_p4 = scmp.ne.s32.totalorder %s445_s10, %s441_s9 }
   0x8   : > { %p515_p3 = por %p45_p2, %p44_p1  ;;  %s32_s19 = ssub.s32 %s457_s13, %s594_s16 }
   0x9   : > { %p51_p5 = scmp.eq.s32.totalorder %s316_s15, 0  ;;  %p35_p6 = scmp.eq.s32.totalorder %s32_s19, 0 }
   0xa   : > { %p334_p8 = scmp.lt.s32.totalorder %s461_s14, 2  ;;  %s126_s22 = sand.u32 1, %s449_s11  }
   0xb   : > { %p522_p7 = por %p51_p5, %p50_p4  ;;  %s321_s23 = sshll.u32 %s457_s13, 7 }
   0xc   : > { %s528_s21 = scalar_select %p35_p6, %s449_s11, %s37_s17  }
   0xd   : > { %s320_s24 = sshll.u32 %s126_s22, 3  ;;  %s136_s27 = scalar_lea.hbm %s582_s0, %s321_s23 }
   0xe   : > { %s130_s28 = scalar_lea.vmem [#allocation4], %s320_s24  ;;  %p537_p9 = pnand %p334_p8, %p515_p3 }
   0xf   : > { %s138_s29 = sshll.u32 %s130_s28, 4  ;;  %p322_p10 = scmp.ge.s32.totalorder %s461_s14, 1  ;;  %s139_s29 = int_to_ptr.vmem [resolvable:$true] %s138_s29 }
  0x10   : > { %p143_p11 = scmp.lt.s32.totalorder %s461_s14, 3  ;;  %s127_s3 = scalar_lea.sflag [#allocation5], %s126_s22 }
  0x11   : > { %p385_p12 = pneg %p537_p9  ;;  %s396_s4 = scalar_lea.vmem %s139_s29, 128 }
  0x12   : > { %p397_p13 = scmp.ne.s32.totalorder %s139_s29, %s396_s4  ;;  %s463_s5 = smov [#allocation4]  }
  0x13   : > { %s401_s6 = sshll.u32 %s463_s5, 4  ;;  %s402_s6 = int_to_ptr.vmem [resolvable:$false] %s401_s6 }
  0x14   : > { %p399_p0 = pnand %p397_p13, %p385_p12  ;;  %s403_s7 = scalar_lea.vmem %s402_s6, 256 }
  0x15   : > { %p404_p2 = scmp.lt.s32.totalorder %s139_s29, %s402_s6  ;;  %p405_p3 = scmp.lt.s32.totalorder %s403_s7, %s396_s4 }
  0x16   : > { %p400_p1 = pneg %p399_p0 }
  0x17   : > { %p406_p4 = por %p405_p3, %p404_p2 }
  0x19   : > { %p407_p5 = pnand %p406_p4, %p400_p1 }
  0x1b   : > { %410 = shalt.err (!%p407_p5)
}
  0x1c   : > { %333 = dma.hbm_to_vmem [thread:$0]  (!%p537_p9), %s136_s27, 128, %s139_s29, %s127_s3  }
  0x1d   : > { %p144_p6 = pnand %p322_p10, %p143_p11 }
  0x1e   : > { %s149_s8 = sand.u32 (!%p144_p6), 1, %s445_s10  }
  0x1f   : > { %147 = sbr.rel (%p144_p6) target bundleno = 181 (0xb5), region = 24  ;;  %s323_s9 = sshll.u32 (!%p144_p6), %s149_s8, 3 }
  0x20   : > { %s150_s15 = scalar_lea.sflag (!%p144_p6), [#allocation5], %s149_s8  ;;  %s153_s17 = scalar_lea.vmem (!%p144_p6), [#allocation4], %s323_s9 }
  0x24   : > { %436 = dma.done.wait (%p522_p7), %s150_s15, 128  }
  0x25   : > { %438 = vsyncadd (%p522_p7), %s150_s15, 4294967168  ;;  %v191_v0 = vld [vmem:[%s153_s17] sm:$0xff]  ;;  %p177_p8 = scmp.lt.s32.totalorder %s453_s12, 1  ;;  %vm205_vm0 = vcmask 7168  }
  0x26   : > { %203 = vadd.xlane.f32.xlu0 %v191_v0  ;;  %v196_v1 = vmul.f32 %v191_v0, %v191_v0 }
  0x27   : > { %s596_s12 = smov (!%p177_p8, %s453_s12), 1 }
  0x28   : > { %s324_s18 = sshll.u32 %s596_s12, 3 }
  0x29   : > { %s180_s23 = scalar_lea.vmem %s583_s1, %s324_s18  ;;  %s184_s20 = scalar_lea.vmem %s584_s2, %s324_s18 }
  0x2a   : > { %208 = vadd.xlane.f32.xlu0 %v196_v1 }
  0xaf   : > { %v204_v2 = vpop.xlane.xlu0 %203 }
  0xb0   : > { %206 = vst.msk [vmem:[%s180_s23] sm:$0xff] %vm205_vm0, %v204_v2 }
  0xb3   : > { %v209_v3 = vpop.xlane.xlu0 %208 }
  0xb4   : > { %210 = vst.msk [vmem:[%s184_s20] sm:$0xff] %vm205_vm0, %v209_v3 }
  0xb5 PF: > { %s16_s14 = sadd.s32 1, %s461_s14   ;;  %s588_s9 = smov %s445_s10 }
  0xb6   : > { %p13_p7 = scmp.ge.s32.totalorder %s16_s14, 4   ;;  %s589_s10 = smov %s449_s11 }
  0xb7   : > { %s590_s11 = smov %s528_s21  ;;  %s591_s12 = smov %s457_s13 }
  0xb8   : > { %s592_s13 = smov %s594_s16  ;;  %15 = sbr.rel (!%p13_p7) target bundleno = 4 (0x4), region = 84 }
  0xbd   :  { %244 = vsyncpa [#allocation5], 1 }
  0xbe   :  { %246 = vsyncpa [#allocation5 + $0x1], 1 }

</bundles_post_ra>
